<compile_context>
chip_gen: v7x
topology: tpu7x:2x2x1
jax: 0.10.0
libtpu: 0.0.40
codegen_flags: <defaults>
</compile_context>

<pallas_src>
import functools

import jax
import jax.numpy as jnp
from jax import lax
from jax.experimental import pallas as pl
from jax.experimental.pallas import tpu as pltpu

EPS = 1e-5
MATMUL_DTYPE = jnp.bfloat16      # MXU operand dtype (accumulation is f32)
VMEM_LIMIT = 32 * 1024 * 1024    # within default scoped VMEM on v5e/v6e/v7x


def _round_up(x, m):
    return (x + m - 1) // m * m


# ----------------------------- Pallas kernels ------------------------------ #

def _conv_stats_kernel(pT_ref, wT_ref, y_ref, sum_ref, ssq_ref):
    """Pass A: conv tile (MXU) + accumulate per-channel sum / sum-of-squares."""
    @pl.when(pl.program_id(0) == 0)
    def _():
        sum_ref[...] = jnp.zeros_like(sum_ref)
        ssq_ref[...] = jnp.zeros_like(ssq_ref)

    # (C, KKCp) @ (KKCp, TM) -> (C, TM), bf16 operands, f32 accumulation.
    y = jnp.dot(wT_ref[...], pT_ref[...], preferred_element_type=jnp.float32)
    y_ref[...] = y
    # Fused single-pass stats (var formed later as E[y^2] - mean^2, in f32).
    sum_ref[...] += jnp.sum(y, axis=1, keepdims=True)
    ssq_ref[...] += jnp.sum(y * y, axis=1, keepdims=True)


def _bn_relu_kernel(y_ref, sum_ref, ssq_ref, g_ref, be_ref, o_ref, *, inv_count):
    """Pass B (stage 1): normalize with global stats, gamma/beta, ReLU."""
    mean = sum_ref[...] * inv_count                       # (C, 1)
    var = ssq_ref[...] * inv_count - mean * mean          # biased variance
    scale = g_ref[...] * lax.rsqrt(var + EPS)             # (C, 1)
    shift = be_ref[...] - mean * scale
    o_ref[...] = jnp.maximum(y_ref[...] * scale + shift, 0.0)


def _bn_add_kernel(y_ref, res_ref, sum_ref, ssq_ref, g_ref, be_ref, o_ref, *,
                   inv_count):
    """Pass B (stage 2): normalize with global stats, gamma/beta, + residual."""
    mean = sum_ref[...] * inv_count
    var = ssq_ref[...] * inv_count - mean * mean
    scale = g_ref[...] * lax.rsqrt(var + EPS)
    shift = be_ref[...] - mean * scale
    o_ref[...] = y_ref[...] * scale + shift + res_ref[...]


# --------------------------- pallas_call wrappers --------------------------- #

def _conv_stats(pT, wT, C, tm):
    KKCp, MP = pT.shape
    return pl.pallas_call(
        _conv_stats_kernel,
        out_shape=(jax.ShapeDtypeStruct((C, MP), jnp.float32),   # conv slab
                   jax.ShapeDtypeStruct((C, 1), jnp.float32),    # sum
                   jax.ShapeDtypeStruct((C, 1), jnp.float32)),   # sum of sq
        grid_spec=pltpu.PrefetchScalarGridSpec(
            num_scalar_prefetch=0,
            grid=(MP // tm,),
            in_specs=[pl.BlockSpec((KKCp, tm), lambda i: (0, i)),
                      pl.BlockSpec((C, KKCp), lambda i: (0, 0))],
            out_specs=(pl.BlockSpec((C, tm), lambda i: (0, i)),
                       pl.BlockSpec((C, 1), lambda i: (0, 0)),
                       pl.BlockSpec((C, 1), lambda i: (0, 0)))),
        compiler_params=pltpu.CompilerParams(
            dimension_semantics=("arbitrary",),   # resident stat accumulators
            vmem_limit_bytes=VMEM_LIMIT),
    )(pT, wT)


def _bn_relu(y, s_sum, s_ssq, g, be, tm, inv_count):
    C, MP = y.shape
    kernel = functools.partial(_bn_relu_kernel, inv_count=inv_count)
    return pl.pallas_call(
        kernel,
        out_shape=jax.ShapeDtypeStruct((C, MP), jnp.float32),
        grid_spec=pltpu.PrefetchScalarGridSpec(
            num_scalar_prefetch=0,
            grid=(MP // tm,),
            in_specs=[pl.BlockSpec((C, tm), lambda i: (0, i)),
                      pl.BlockSpec((C, 1), lambda i: (0, 0)),
                      pl.BlockSpec((C, 1), lambda i: (0, 0)),
                      pl.BlockSpec((C, 1), lambda i: (0, 0)),
                      pl.BlockSpec((C, 1), lambda i: (0, 0))],
            out_specs=pl.BlockSpec((C, tm), lambda i: (0, i))),
        compiler_params=pltpu.CompilerParams(
            dimension_semantics=("parallel",),    # independent tiles (2 TCs on v7x)
            vmem_limit_bytes=VMEM_LIMIT),
    )(y, s_sum, s_ssq, g, be)


def _bn_add(y, res, s_sum, s_ssq, g, be, tm, inv_count):
    C, MP = y.shape
    kernel = functools.partial(_bn_add_kernel, inv_count=inv_count)
    return pl.pallas_call(
        kernel,
        out_shape=jax.ShapeDtypeStruct((C, MP), jnp.float32),
        grid_spec=pltpu.PrefetchScalarGridSpec(
            num_scalar_prefetch=0,
            grid=(MP // tm,),
            in_specs=[pl.BlockSpec((C, tm), lambda i: (0, i)),
                      pl.BlockSpec((C, tm), lambda i: (0, i)),
                      pl.BlockSpec((C, 1), lambda i: (0, 0)),
                      pl.BlockSpec((C, 1), lambda i: (0, 0)),
                      pl.BlockSpec((C, 1), lambda i: (0, 0)),
                      pl.BlockSpec((C, 1), lambda i: (0, 0))],
            out_specs=pl.BlockSpec((C, tm), lambda i: (0, i))),
        compiler_params=pltpu.CompilerParams(
            dimension_semantics=("parallel",),
            vmem_limit_bytes=VMEM_LIMIT),
    )(y, res, s_sum, s_ssq, g, be)


# ------------------------------- JAX glue ----------------------------------- #

def circular_pad_hw(x, p):
    """Matches CircularPadding on the last two (H, W) dims: zero-pad H and W
    by p, then wrap the W edges (copied from the already zero-padded tensor,
    so the wrapped corner rows stay zero, exactly like the PyTorch code)."""
    if p == 0:
        return x
    cfg = [(0, 0)] * (x.ndim - 2) + [(p, p), (p, p)]
    xp = jnp.pad(x, cfg)
    Wp = xp.shape[-1]
    xp = xp.at[..., :, 0:p].set(xp[..., :, Wp - 2 * p:Wp - p])
    xp = xp.at[..., :, Wp - p:Wp].set(xp[..., :, p:2 * p])
    return xp


def _patches_T(x_cnhw, K, pad, MP, KKCp):
    """(C,N,H,W) -> transposed im2col (KKCp, MP): rows ordered (kh, kw, c),
    columns ordered (n, h, w); zero-padded to KKCp rows / MP columns."""
    C, N, H, W = x_cnhw.shape
    xp = circular_pad_hw(x_cnhw, pad)
    rows = [xp[:, :, kh:kh + H, kw:kw + W].reshape(C, N * H * W)
            for kh in range(K) for kw in range(K)]
    pT = jnp.concatenate(rows, axis=0)                       # (K*K*C, M)
    pT = jnp.pad(pT, ((0, KKCp - K * K * C), (0, MP - N * H * W)))
    return pT.astype(MATMUL_DTYPE)


@functools.partial(jax.jit, static_argnames=("K", "pad", "tm"))
def resblock_forward(x_nchw, params, *, K, pad, tm=256):
    N, C, H, W = x_nchw.shape
    M = N * H * W
    MP = _round_up(M, tm)
    KKCp = params["w1"].shape[1]
    inv_count = 1.0 / M   # padded columns are zero -> contribute 0 to stats

    x_cnhw = jnp.transpose(x_nchw, (1, 0, 2, 3)).astype(jnp.float32)  # (C,N,H,W)
    res = jnp.pad(x_cnhw.reshape(C, M), ((0, 0), (0, MP - M)))        # (C, MP)

    # stage 1: conv1 -> bn1 -> relu
    p1 = _patches_T(x_cnhw, K, pad, MP, KKCp)
    y1, s1, q1 = _conv_stats(p1, params["w1"], C, tm)
    out1 = _bn_relu(y1, s1, q1, params["g1"], params["be1"], tm, inv_count)

    # stage 2: conv2 -> bn2 -> (+ residual)
    out1_cnhw = out1[:, :M].reshape(C, N, H, W)
    p2 = _patches_T(out1_cnhw, K, pad, MP, KKCp)
    y2, s2, q2 = _conv_stats(p2, params["w2"], C, tm)
    out2 = _bn_add(y2, res, s2, q2, params["g2"], params["be2"], tm, inv_count)

    return jnp.transpose(out2[:, :M].reshape(C, N, H, W), (1, 0, 2, 3))  # NCHW


# ----------------------------- parameters ----------------------------------- #

def init_raw_params(key, C, K):
    ks = jax.random.split(key, 8)
    s = 1.0 / jnp.sqrt(C * K * K)
    return {
        "w1": jax.random.uniform(ks[0], (K, K, C, C), jnp.float32, -s, s),
        "b1": jax.random.uniform(ks[1], (C,), jnp.float32, -s, s),
        "g1": 1.0 + 0.1 * jax.random.normal(ks[2], (C,), jnp.float32),
        "be1": 0.1 * jax.random.normal(ks[3], (C,), jnp.float32),
        "w2": jax.random.uniform(ks[4], (K, K, C, C), jnp.float32, -s, s),
        "b2": jax.random.uniform(ks[5], (C,), jnp.float32, -s, s),
        "g2": 1.0 + 0.1 * jax.random.normal(ks[6], (C,), jnp.float32),
        "be2": 0.1 * jax.random.normal(ks[7], (C,), jnp.float32),
    }


def prepare_params(raw, K):
    """Kernel layout: W^T (C, KKC_pad) in bf16, per-channel (C,1) f32 vectors.
    Conv biases are dropped (exactly cancelled by training-mode BN)."""
    C = raw["w1"].shape[-1]
    KKC = K * K * C
    KKCp = _round_up(KKC, 8)

    def wT(w):
        w2d = w.reshape(KKC, C)                  # rows ordered (kh, kw, cin)
        wt = jnp.pad(w2d.T, ((0, 0), (0, KKCp - KKC)))
        return wt.astype(MATMUL_DTYPE)

    def col(v):
        return v.reshape(-1, 1).astype(jnp.float32)

    return {"w1": wT(raw["w1"]), "g1": col(raw["g1"]), "be1": col(raw["be1"]),
            "w2": wT(raw["w2"]), "g2": col(raw["g2"]), "be2": col(raw["be2"])}


# --------------------------- pure-JAX reference ------------------------------ #

def ref_forward(x_nchw, raw, *, K, pad, conv_dtype=jnp.float32):
    """Independent reference (lax.conv) matching PyTorch training-mode BN.
    conv_dtype lets us match the kernel's bf16 MXU operand precision."""
    def conv(x, w_khwc, b):
        xp = circular_pad_hw(x, pad)
        w_oihw = jnp.transpose(w_khwc, (3, 2, 0, 1))     # (Cout,Cin,K,K)
        y = lax.conv_general_dilated(
            xp.astype(conv_dtype), w_oihw.astype(conv_dtype), (1, 1), "VALID",
            dimension_numbers=("NCHW", "OIHW", "NCHW"),
            preferred_element_type=jnp.float32)
        return y + b.reshape(1, -1, 1, 1)

    def bn(y, g, be):
        mean = jnp.mean(y, axis=(0, 2, 3), keepdims=True)
        var = jnp.mean((y - mean) ** 2, axis=(0, 2, 3), keepdims=True)
        return ((y - mean) * lax.rsqrt(var + EPS) * g.reshape(1, -1, 1, 1)
                + be.reshape(1, -1, 1, 1))

    x = x_nchw.astype(jnp.float32)
    y = jnp.maximum(bn(conv(x, raw["w1"], raw["b1"]), raw["g1"], raw["be1"]), 0.0)
    y = bn(conv(y, raw["w2"], raw["b2"]), raw["g2"], raw["be2"]) + x
    return y


# ---------------------------------- main ------------------------------------ #

if __name__ == "__main__":
    N, C, H, W = 2, 4, 16, 16   # ResBlock requires in_channels == out_channels
    K, PAD = 3, 1

    key = jax.random.PRNGKey(0)
    k_x, k_p = jax.random.split(key)
    x = jax.random.normal(k_x, (N, C, H, W), dtype=jnp.float32)

    raw = init_raw_params(k_p, C, K)
    params = prepare_params(raw, K)

    out = jax.block_until_ready(resblock_forward(x, params, K=K, pad=PAD))
    assert out.shape == (N, C, H, W)

    # 1) strict structural check vs matched-precision (bf16 conv operands) ref
    ref_bf = jax.block_until_ready(
        ref_forward(x, raw, K=K, pad=PAD, conv_dtype=jnp.bfloat16))
    err_bf = jnp.max(jnp.abs(out - ref_bf))
    assert jnp.allclose(out, ref_bf, atol=2e-2, rtol=2e-2), \
        f"max abs err vs matched-precision ref = {err_bf}"

    # 2) loose sanity check vs full-f32 PyTorch semantics (bf16 MXU operands
    #    are a deliberate perf choice; only the matmul inputs are rounded)
    ref32 = jax.block_until_ready(
        ref_forward(x, raw, K=K, pad=PAD, conv_dtype=jnp.float32))
    err32 = jnp.max(jnp.abs(out - ref32))
    assert jnp.allclose(out, ref32, atol=1e-1, rtol=1e-1), \
        f"max abs err vs f32 ref = {err32}"

    print("KERNEL_OK")
</pallas_src>

<mosaic_0001>
module attributes {stable_mosaic.version = 11 : i64} {
  func.func @_conv_stats_kernel(%arg0: i32, %arg1: memref<40x256xbf16, #tpu.memory_space<vmem>>, %arg2: memref<4x40xbf16, #tpu.memory_space<vmem>>, %arg3: memref<4x256xf32, #tpu.memory_space<vmem>>, %arg4: memref<4x1xf32, #tpu.memory_space<vmem>>, %arg5: memref<4x1xf32, #tpu.memory_space<vmem>>) attributes {dimension_semantics = [#tpu.dimension_semantics<arbitrary>], iteration_bounds = array<i64: 2>, scalar_prefetch = 0 : i64, scratch_operands = 0 : i64, tpu.core_type = #tpu.core_type<tc>, window_params = [{transform_indices = @transform_0, window_bounds = array<i64: 40, 256>}, {pipeline_mode = #tpu.pipeline_mode<synchronous>, transform_indices = @transform_1, window_bounds = array<i64: 4, 40>}, {transform_indices = @transform_2, window_bounds = array<i64: 4, 256>}, {pipeline_mode = #tpu.pipeline_mode<synchronous>, transform_indices = @transform_3, window_bounds = array<i64: 4, 1>}, {pipeline_mode = #tpu.pipeline_mode<synchronous>, transform_indices = @transform_4, window_bounds = array<i64: 4, 1>}]} {
    %c0_i32 = arith.constant 0 : i32
    %0 = arith.cmpi eq, %arg0, %c0_i32 : i32
    %1 = arith.extui %0 : i1 to i32
    %c0_i32_0 = arith.constant 0 : i32
    %2 = arith.cmpi ne, %1, %c0_i32_0 : i32
    scf.if %2 {
      %cst_16 = arith.constant 0.000000e+00 : f32
      %18 = vector.broadcast %cst_16 : f32 to vector<4x1xf32>
      %c0_17 = arith.constant 0 : index
      %c0_18 = arith.constant 0 : index
      %19 = vector.load %arg4[%c0_17, %c0_18] : memref<4x1xf32, #tpu.memory_space<vmem>>, vector<4x1xf32>
      tpu.vector_store %arg4[%c0_17, %c0_18], %18 {strides = array<i32>} : memref<4x1xf32, #tpu.memory_space<vmem>>, vector<4x1xf32>,
      %cst_19 = arith.constant 0.000000e+00 : f32
      %20 = vector.broadcast %cst_19 : f32 to vector<4x1xf32>
      %c0_20 = arith.constant 0 : index
      %c0_21 = arith.constant 0 : index
      %21 = vector.load %arg5[%c0_20, %c0_21] : memref<4x1xf32, #tpu.memory_space<vmem>>, vector<4x1xf32>
      tpu.vector_store %arg5[%c0_20, %c0_21], %20 {strides = array<i32>} : memref<4x1xf32, #tpu.memory_space<vmem>>, vector<4x1xf32>,
    } else {
    }
    %c0 = arith.constant 0 : index
    %c0_1 = arith.constant 0 : index
    %3 = vector.load %arg2[%c0, %c0_1] : memref<4x40xbf16, #tpu.memory_space<vmem>>, vector<4x40xbf16>
    %c0_2 = arith.constant 0 : index
    %c0_3 = arith.constant 0 : index
    %4 = vector.load %arg1[%c0_2, %c0_3] : memref<40x256xbf16, #tpu.memory_space<vmem>>, vector<40x256xbf16>
    %cst = arith.constant dense<0.000000e+00> : vector<4x256xf32>
    %5 = tpu.matmul %3, %4, %cst {dimension_numbers = #tpu.dot_dimension_numbers<[1], [0], [0], [1], [0, 0, 1, 1], [], []>} : vector<4x40xbf16>, vector<40x256xbf16>, vector<4x256xf32> -> vector<4x256xf32>
    %c0_4 = arith.constant 0 : index
    %c0_5 = arith.constant 0 : index
    %6 = vector.load %arg3[%c0_4, %c0_5] : memref<4x256xf32, #tpu.memory_space<vmem>>, vector<4x256xf32>
    tpu.vector_store %arg3[%c0_4, %c0_5], %5 {strides = array<i32>} : memref<4x256xf32, #tpu.memory_space<vmem>>, vector<4x256xf32>,
    %c0_6 = arith.constant 0 : index
    %c0_7 = arith.constant 0 : index
    %7 = vector.load %arg4[%c0_6, %c0_7] : memref<4x1xf32, #tpu.memory_space<vmem>>, vector<4x1xf32>
    %cst_8 = arith.constant dense<0.000000e+00> : vector<4xf32>
    %8 = vector.multi_reduction <add>, %5, %cst_8 [1] : vector<4x256xf32> to vector<4xf32>
    %9 = vector.shape_cast %8 : vector<4xf32> to vector<4x1xf32>
    %10 = arith.addf %7, %9 : vector<4x1xf32>
    %c0_9 = arith.constant 0 : index
    %c0_10 = arith.constant 0 : index
    %11 = vector.load %arg4[%c0_9, %c0_10] : memref<4x1xf32, #tpu.memory_space<vmem>>, vector<4x1xf32>
    tpu.vector_store %arg4[%c0_9, %c0_10], %10 {strides = array<i32>} : memref<4x1xf32, #tpu.memory_space<vmem>>, vector<4x1xf32>,
    %c0_11 = arith.constant 0 : index
    %c0_12 = arith.constant 0 : index
    %12 = vector.load %arg5[%c0_11, %c0_12] : memref<4x1xf32, #tpu.memory_space<vmem>>, vector<4x1xf32>
    %13 = arith.mulf %5, %5 : vector<4x256xf32>
    %cst_13 = arith.constant dense<0.000000e+00> : vector<4xf32>
    %14 = vector.multi_reduction <add>, %13, %cst_13 [1] : vector<4x256xf32> to vector<4xf32>
    %15 = vector.shape_cast %14 : vector<4xf32> to vector<4x1xf32>
    %16 = arith.addf %12, %15 : vector<4x1xf32>
    %c0_14 = arith.constant 0 : index
    %c0_15 = arith.constant 0 : index
    %17 = vector.load %arg5[%c0_14, %c0_15] : memref<4x1xf32, #tpu.memory_space<vmem>>, vector<4x1xf32>
    tpu.vector_store %arg5[%c0_14, %c0_15], %16 {strides = array<i32>} : memref<4x1xf32, #tpu.memory_space<vmem>>, vector<4x1xf32>,
    return
  }
  func.func @transform_0(%arg0: i32) -> (i32, i32) {
    %c0_i32 = arith.constant 0 : i32
    %c0_i32_0 = arith.constant 0 : i32
    return %c0_i32, %arg0 : i32, i32
  }
  func.func @transform_1(%arg0: i32) -> (i32, i32) {
    %c0_i32 = arith.constant 0 : i32
    %c0_i32_0 = arith.constant 0 : i32
    %c0_i32_1 = arith.constant 0 : i32
    return %c0_i32, %c0_i32_0 : i32, i32
  }
  func.func @transform_2(%arg0: i32) -> (i32, i32) {
    %c0_i32 = arith.constant 0 : i32
    %c0_i32_0 = arith.constant 0 : i32
    return %c0_i32, %arg0 : i32, i32
  }
  func.func @transform_3(%arg0: i32) -> (i32, i32) {
    %c0_i32 = arith.constant 0 : i32
    %c0_i32_0 = arith.constant 0 : i32
    %c0_i32_1 = arith.constant 0 : i32
    return %c0_i32, %c0_i32_0 : i32, i32
  }
  func.func @transform_4(%arg0: i32) -> (i32, i32) {
    %c0_i32 = arith.constant 0 : i32
    %c0_i32_0 = arith.constant 0 : i32
    %c0_i32_1 = arith.constant 0 : i32
    return %c0_i32, %c0_i32_0 : i32, i32
  }
}

module attributes {stable_mosaic.version = 11 : i64} {
  func.func @_bn_relu_kernel(%arg0: i32, %arg1: memref<4x256xf32, #tpu.memory_space<vmem>>, %arg2: memref<4x1xf32, #tpu.memory_space<vmem>>, %arg3: memref<4x1xf32, #tpu.memory_space<vmem>>, %arg4: memref<4x1xf32, #tpu.memory_space<vmem>>, %arg5: memref<4x1xf32, #tpu.memory_space<vmem>>, %arg6: memref<4x256xf32, #tpu.memory_space<vmem>>) attributes {dimension_semantics = [#tpu.dimension_semantics<parallel>], iteration_bounds = array<i64: 2>, scalar_prefetch = 0 : i64, scratch_operands = 0 : i64, tpu.core_type = #tpu.core_type<tc>, window_params = [{transform_indices = @transform_0, window_bounds = array<i64: 4, 256>}, {pipeline_mode = #tpu.pipeline_mode<synchronous>, transform_indices = @transform_1, window_bounds = array<i64: 4, 1>}, {pipeline_mode = #tpu.pipeline_mode<synchronous>, transform_indices = @transform_2, window_bounds = array<i64: 4, 1>}, {pipeline_mode = #tpu.pipeline_mode<synchronous>, transform_indices = @transform_3, window_bounds = array<i64: 4, 1>}, {pipeline_mode = #tpu.pipeline_mode<synchronous>, transform_indices = @transform_4, window_bounds = array<i64: 4, 1>}, {transform_indices = @transform_5, window_bounds = array<i64: 4, 256>}]} {
    %c0 = arith.constant 0 : index
    %c0_0 = arith.constant 0 : index
    %0 = vector.load %arg2[%c0, %c0_0] : memref<4x1xf32, #tpu.memory_space<vmem>>, vector<4x1xf32>
    %cst = arith.constant 0.001953125 : f32
    %1 = vector.broadcast %cst : f32 to vector<4x1xf32>
    %2 = arith.mulf %0, %1 : vector<4x1xf32>
    %c0_1 = arith.constant 0 : index
    %c0_2 = arith.constant 0 : index
    %3 = vector.load %arg3[%c0_1, %c0_2] : memref<4x1xf32, #tpu.memory_space<vmem>>, vector<4x1xf32>
    %cst_3 = arith.constant 0.001953125 : f32
    %4 = vector.broadcast %cst_3 : f32 to vector<4x1xf32>
    %5 = arith.mulf %3, %4 : vector<4x1xf32>
    %6 = arith.mulf %2, %2 : vector<4x1xf32>
    %7 = arith.subf %5, %6 : vector<4x1xf32>
    %c0_4 = arith.constant 0 : index
    %c0_5 = arith.constant 0 : index
    %8 = vector.load %arg4[%c0_4, %c0_5] : memref<4x1xf32, #tpu.memory_space<vmem>>, vector<4x1xf32>
    %cst_6 = arith.constant 9.99999974E-6 : f32
    %9 = vector.broadcast %cst_6 : f32 to vector<4x1xf32>
    %10 = arith.addf %7, %9 : vector<4x1xf32>
    %11 = math.rsqrt %10 : vector<4x1xf32>
    %12 = arith.mulf %8, %11 : vector<4x1xf32>
    %c0_7 = arith.constant 0 : index
    %c0_8 = arith.constant 0 : index
    %13 = vector.load %arg5[%c0_7, %c0_8] : memref<4x1xf32, #tpu.memory_space<vmem>>, vector<4x1xf32>
    %14 = arith.mulf %2, %12 : vector<4x1xf32>
    %15 = arith.subf %13, %14 : vector<4x1xf32>
    %c0_9 = arith.constant 0 : index
    %c0_10 = arith.constant 0 : index
    %16 = vector.load %arg1[%c0_9, %c0_10] : memref<4x256xf32, #tpu.memory_space<vmem>>, vector<4x256xf32>
    %17 = vector.broadcast %12 : vector<4x1xf32> to vector<4x256xf32>
    %18 = arith.mulf %16, %17 : vector<4x256xf32>
    %19 = vector.broadcast %15 : vector<4x1xf32> to vector<4x256xf32>
    %20 = arith.addf %18, %19 : vector<4x256xf32>
    %cst_11 = arith.constant 0.000000e+00 : f32
    %21 = vector.broadcast %cst_11 : f32 to vector<4x256xf32>
    %22 = arith.maximumf %20, %21 : vector<4x256xf32>
    %c0_12 = arith.constant 0 : index
    %c0_13 = arith.constant 0 : index
    %23 = vector.load %arg6[%c0_12, %c0_13] : memref<4x256xf32, #tpu.memory_space<vmem>>, vector<4x256xf32>
    tpu.vector_store %arg6[%c0_12, %c0_13], %22 {strides = array<i32>} : memref<4x256xf32, #tpu.memory_space<vmem>>, vector<4x256xf32>,
    return
  }
  func.func @transform_0(%arg0: i32) -> (i32, i32) {
    %c0_i32 = arith.constant 0 : i32
    %c0_i32_0 = arith.constant 0 : i32
    return %c0_i32, %arg0 : i32, i32
  }
  func.func @transform_1(%arg0: i32) -> (i32, i32) {
    %c0_i32 = arith.constant 0 : i32
    %c0_i32_0 = arith.constant 0 : i32
    %c0_i32_1 = arith.constant 0 : i32
    return %c0_i32, %c0_i32_0 : i32, i32
  }
  func.func @transform_2(%arg0: i32) -> (i32, i32) {
    %c0_i32 = arith.constant 0 : i32
    %c0_i32_0 = arith.constant 0 : i32
    %c0_i32_1 = arith.constant 0 : i32
    return %c0_i32, %c0_i32_0 : i32, i32
  }
  func.func @transform_3(%arg0: i32) -> (i32, i32) {
    %c0_i32 = arith.constant 0 : i32
    %c0_i32_0 = arith.constant 0 : i32
    %c0_i32_1 = arith.constant 0 : i32
    return %c0_i32, %c0_i32_0 : i32, i32
  }
  func.func @transform_4(%arg0: i32) -> (i32, i32) {
    %c0_i32 = arith.constant 0 : i32
    %c0_i32_0 = arith.constant 0 : i32
    %c0_i32_1 = arith.constant 0 : i32
    return %c0_i32, %c0_i32_0 : i32, i32
  }
  func.func @transform_5(%arg0: i32) -> (i32, i32) {
    %c0_i32 = arith.constant 0 : i32
    %c0_i32_0 = arith.constant 0 : i32
    return %c0_i32, %arg0 : i32, i32
  }
}

module attributes {stable_mosaic.version = 11 : i64} {
  func.func @_bn_add_kernel(%arg0: i32, %arg1: memref<4x256xf32, #tpu.memory_space<vmem>>, %arg2: memref<4x256xf32, #tpu.memory_space<vmem>>, %arg3: memref<4x1xf32, #tpu.memory_space<vmem>>, %arg4: memref<4x1xf32, #tpu.memory_space<vmem>>, %arg5: memref<4x1xf32, #tpu.memory_space<vmem>>, %arg6: memref<4x1xf32, #tpu.memory_space<vmem>>, %arg7: memref<4x256xf32, #tpu.memory_space<vmem>>) attributes {dimension_semantics = [#tpu.dimension_semantics<parallel>], iteration_bounds = array<i64: 2>, scalar_prefetch = 0 : i64, scratch_operands = 0 : i64, tpu.core_type = #tpu.core_type<tc>, window_params = [{transform_indices = @transform_0, window_bounds = array<i64: 4, 256>}, {transform_indices = @transform_1, window_bounds = array<i64: 4, 256>}, {pipeline_mode = #tpu.pipeline_mode<synchronous>, transform_indices = @transform_2, window_bounds = array<i64: 4, 1>}, {pipeline_mode = #tpu.pipeline_mode<synchronous>, transform_indices = @transform_3, window_bounds = array<i64: 4, 1>}, {pipeline_mode = #tpu.pipeline_mode<synchronous>, transform_indices = @transform_4, window_bounds = array<i64: 4, 1>}, {pipeline_mode = #tpu.pipeline_mode<synchronous>, transform_indices = @transform_5, window_bounds = array<i64: 4, 1>}, {transform_indices = @transform_6, window_bounds = array<i64: 4, 256>}]} {
    %c0 = arith.constant 0 : index
    %c0_0 = arith.constant 0 : index
    %0 = vector.load %arg3[%c0, %c0_0] : memref<4x1xf32, #tpu.memory_space<vmem>>, vector<4x1xf32>
    %cst = arith.constant 0.001953125 : f32
    %1 = vector.broadcast %cst : f32 to vector<4x1xf32>
    %2 = arith.mulf %0, %1 : vector<4x1xf32>
    %c0_1 = arith.constant 0 : index
    %c0_2 = arith.constant 0 : index
    %3 = vector.load %arg4[%c0_1, %c0_2] : memref<4x1xf32, #tpu.memory_space<vmem>>, vector<4x1xf32>
    %cst_3 = arith.constant 0.001953125 : f32
    %4 = vector.broadcast %cst_3 : f32 to vector<4x1xf32>
    %5 = arith.mulf %3, %4 : vector<4x1xf32>
    %6 = arith.mulf %2, %2 : vector<4x1xf32>
    %7 = arith.subf %5, %6 : vector<4x1xf32>
    %c0_4 = arith.constant 0 : index
    %c0_5 = arith.constant 0 : index
    %8 = vector.load %arg5[%c0_4, %c0_5] : memref<4x1xf32, #tpu.memory_space<vmem>>, vector<4x1xf32>
    %cst_6 = arith.constant 9.99999974E-6 : f32
    %9 = vector.broadcast %cst_6 : f32 to vector<4x1xf32>
    %10 = arith.addf %7, %9 : vector<4x1xf32>
    %11 = math.rsqrt %10 : vector<4x1xf32>
    %12 = arith.mulf %8, %11 : vector<4x1xf32>
    %c0_7 = arith.constant 0 : index
    %c0_8 = arith.constant 0 : index
    %13 = vector.load %arg6[%c0_7, %c0_8] : memref<4x1xf32, #tpu.memory_space<vmem>>, vector<4x1xf32>
    %14 = arith.mulf %2, %12 : vector<4x1xf32>
    %15 = arith.subf %13, %14 : vector<4x1xf32>
    %c0_9 = arith.constant 0 : index
    %c0_10 = arith.constant 0 : index
    %16 = vector.load %arg1[%c0_9, %c0_10] : memref<4x256xf32, #tpu.memory_space<vmem>>, vector<4x256xf32>
    %17 = vector.broadcast %12 : vector<4x1xf32> to vector<4x256xf32>
    %18 = arith.mulf %16, %17 : vector<4x256xf32>
    %19 = vector.broadcast %15 : vector<4x1xf32> to vector<4x256xf32>
    %20 = arith.addf %18, %19 : vector<4x256xf32>
    %c0_11 = arith.constant 0 : index
    %c0_12 = arith.constant 0 : index
    %21 = vector.load %arg2[%c0_11, %c0_12] : memref<4x256xf32, #tpu.memory_space<vmem>>, vector<4x256xf32>
    %22 = arith.addf %20, %21 : vector<4x256xf32>
    %c0_13 = arith.constant 0 : index
    %c0_14 = arith.constant 0 : index
    %23 = vector.load %arg7[%c0_13, %c0_14] : memref<4x256xf32, #tpu.memory_space<vmem>>, vector<4x256xf32>
    tpu.vector_store %arg7[%c0_13, %c0_14], %22 {strides = array<i32>} : memref<4x256xf32, #tpu.memory_space<vmem>>, vector<4x256xf32>,
    return
  }
  func.func @transform_0(%arg0: i32) -> (i32, i32) {
    %c0_i32 = arith.constant 0 : i32
    %c0_i32_0 = arith.constant 0 : i32
    return %c0_i32, %arg0 : i32, i32
  }
  func.func @transform_1(%arg0: i32) -> (i32, i32) {
    %c0_i32 = arith.constant 0 : i32
    %c0_i32_0 = arith.constant 0 : i32
    return %c0_i32, %arg0 : i32, i32
  }
  func.func @transform_2(%arg0: i32) -> (i32, i32) {
    %c0_i32 = arith.constant 0 : i32
    %c0_i32_0 = arith.constant 0 : i32
    %c0_i32_1 = arith.constant 0 : i32
    return %c0_i32, %c0_i32_0 : i32, i32
  }
  func.func @transform_3(%arg0: i32) -> (i32, i32) {
    %c0_i32 = arith.constant 0 : i32
    %c0_i32_0 = arith.constant 0 : i32
    %c0_i32_1 = arith.constant 0 : i32
    return %c0_i32, %c0_i32_0 : i32, i32
  }
  func.func @transform_4(%arg0: i32) -> (i32, i32) {
    %c0_i32 = arith.constant 0 : i32
    %c0_i32_0 = arith.constant 0 : i32
    %c0_i32_1 = arith.constant 0 : i32
    return %c0_i32, %c0_i32_0 : i32, i32
  }
  func.func @transform_5(%arg0: i32) -> (i32, i32) {
    %c0_i32 = arith.constant 0 : i32
    %c0_i32_0 = arith.constant 0 : i32
    %c0_i32_1 = arith.constant 0 : i32
    return %c0_i32, %c0_i32_0 : i32, i32
  }
  func.func @transform_6(%arg0: i32) -> (i32, i32) {
    %c0_i32 = arith.constant 0 : i32
    %c0_i32_0 = arith.constant 0 : i32
    return %c0_i32, %arg0 : i32, i32
  }
}

</mosaic_0001>

<bundles_post_ra>
// kernel: resblock_forward.4
= control target key start
LH: loop header
LB: loop body
LE: loop exit
PB: predicated region body
PF: predicated region fallthrough
CT: control target
= control target key end

     0   :  { %s543_s15 = smov 0   ;;  %s545_s16 = smov 0   ;;  %s627_s0 = inlined_call_operand.vmem [shape: bf16[40,512], index: 0, kind: input, shape index: {}]   ;;  %s628_s1 = inlined_call_operand.vmem [shape: bf16[4,40], index: 1, kind: input, shape index: {}]   ;;  %s629_s2 = inlined_call_operand.vmem [shape: f32[4,512], index: 2, kind: output, shape index: {0}]   ;;  %s630_s3 = inlined_call_operand.vmem [shape: f32[4,1], index: 3, kind: output, shape index: {1}]   ;;  %s631_s4 = inlined_call_operand.vmem [shape: f32[4,1], index: 4, kind: output, shape index: {2}]  }
   0x1   :  { %s547_s17 = smov 0  }
   0x2 LB: > { %s435_s18 = sadd.s32 4294967295, %s514_s17   ;;  %s560_s19 = sadd.s32 1, %s514_s17   ;;  %s514_s17 = sphi %s547_s17, %s634_s17   ;;  %s510_s16 = sphi %s545_s16, %s633_s16   ;;  %s506_s15 = sphi %s543_s15, %s632_s15  }
   0x3   : > { %s19_s20 = ssub.s32 %s514_s17, %s560_s19  ;;  %s22_s21 = sadd.s32 1, %s510_s16 }
   0x4   : > { %p20_p0 = scmp.eq.s32.totalorder %s19_s20, 0  ;;  %p29_p1 = scmp.ne.s32.totalorder %s510_s16, %s506_s15 }
   0x5   : > { %p30_p2 = scmp.eq.s32.totalorder %s514_s17, 0  ;;  %p438_p4 = scmp.ge.s32.totalorder %s514_s17, 2 }
   0x6   : > { %s569_s22 = scalar_select %p20_p0, %s510_s16, %s22_s21  }
   0x7   : > { %p31_p3 = por %p30_p2, %p29_p1  ;;  %147 = sbr.rel (%p438_p4) target bundleno = 21 (0x15), region = 20 }
   0xe   : > { %150 = sbr.rel (!%p31_p3) target bundleno = 21 (0x15), region = 24  ;;  %s152_s23 = sand.u32 (%p31_p3), 1, %s510_s16  }
   0xf   : > { %s455_s24 = sshll.u32 (%p31_p3), %s514_s17, 3  ;;  %s456_s25 = smul.u32 (%p31_p3), 40, %s152_s23 }
  0x10   : > { %s157_s28 = scalar_lea.vmem (%p31_p3), %s627_s0, %s455_s24 }
  0x11   : > { %v193_v0 = vld [vmem:[%s157_s28] sm:$0xff] (%p31_p3)  ;;  %v195_v1 = vld [vmem:[%s157_s28 + $0x10] sm:$0xff] (%p31_p3)  ;;  %s154_s29 = scalar_lea.vmem (%p31_p3), [#allocation2], %s456_s25 }
  0x12   : > { %v197_v2 = vld [vmem:[%s157_s28 + $0x20] sm:$0xff] (%p31_p3)  ;;  %v199_v3 = vld [vmem:[%s157_s28 + $0x30] sm:$0xff] (%p31_p3)  ;;  %194 = vst [vmem:[%s154_s29] sm:$0xff] (%p31_p3), %v193_v0  ;;  %196 = vst [vmem:[%s154_s29 + $0x8] sm:$0xff] (%p31_p3), %v195_v1 }
  0x13   : > { %v201_v4 = vld [vmem:[%s157_s28 + $0x40] sm:$0xff] (%p31_p3)  ;;  %198 = vst [vmem:[%s154_s29 + $0x10] sm:$0xff] (%p31_p3), %v197_v2  ;;  %200 = vst [vmem:[%s154_s29 + $0x18] sm:$0xff] (%p31_p3), %v199_v3 }
  0x14   : > { %202 = vst [vmem:[%s154_s29 + $0x20] sm:$0xff] (%p31_p3), %v201_v4 }
  0x15 PF: > { %p441_p5 = scmp.ge.s32.totalorder %s514_s17, 1  ;;  %p207_p6 = scmp.lt.s32.totalorder %s514_s17, 3 }
  0x17   : > { %p208_p7 = pnand %p441_p5, %p207_p6 }
  0x18   : > { %s214_s30 = sand.u32 (!%p208_p7), 1, %s506_s15   ;;  %s442_s5 = sshll.u32 (!%p208_p7), %s435_s18, 1 }
  0x19   : > { %211 = sbr.rel (%p208_p7) target bundleno = 417 (0x1a1), region = 62  ;;  %p241_p8 = scmp.lt.s32.totalorder (!%p208_p7), %s442_s5, 3 }
  0x1a   : > { %s457_s6 = smul.u32 (!%p208_p7), 40, %s214_s30  ;;  %p444_p9 = scmp.ne.s32.totalorder (!%p208_p7), %s435_s18, 0 }
  0x1c   : > { %s216_s11 = scalar_lea.vmem (!%p208_p7), [#allocation2], %s457_s6 }
  0x20   : > { %s636_s5 = smov (!%p241_p8, %s442_s5), 3  ;;  %250 = sbr.rel (%p444_p9) target bundleno = 39 (0x27), region = 70 }
  0x21   : > { %s443_s7 = sshll.u32 %s636_s5, 2  ;;  %vm251_vm0 = vcmask (!%p444_p9), 3072   ;;  %v516_v5 = vmov (!%p444_p9), 0.0  }
  0x22   : > { %s585_s10 = scalar_lea.vmem %s629_s2, %s443_s7  ;;  %252 = vst.msk [vmem:[%s630_s3] sm:$0xf] (!%p444_p9), %vm251_vm0, %v516_v5  ;;  %253 = vst.msk [vmem:[%s631_s4] sm:$0xf] (!%p444_p9), %vm251_vm0, %v516_v5 }
  0x27 PF: > { %v484_v6 = vld [vmem:[%s216_s11 + $0x4] ss:$8 sps:$4 sm:$0xff]   ;;  %v486_v7 = vld [vmem:[%s216_s11] ss:$8 sps:$4 sm:$0xff]   ;;  %v517_v8 = vmov 0   ;;  %vm289_vm1 = vcmask 1043456  }
  0x28   : > { %328 = vmatprep.mubr.bf16.mxu0 %v517_v8  ;;  %296 = vmatprep.subr.bf16.mxu0 %v484_v6  ;;  %v487_v9 = vld [vmem:[%s216_s11 + $0x14] ss:$8 sps:$4 sm:$0xff]   ;;  %v259_v10 = vld [vmem:[%s216_s11 + $0x20] sm:$0xff]  ;;  %v489_v11 = vld [vmem:[%s216_s11 + $0x10] ss:$8 sps:$4 sm:$0xff]   ;;  %vm285_vm2 = vcmask 326656  }
  0x29   : > { %297 = vmatpush1.bf16.msra.mxu0 %v486_v7  ;;  %v450_v12 = vcombine.high %v259_v10, %v259_v10  ;;  %v449_v13 = vcombine.low %v259_v10, %v259_v10  ;;  %v254_v15 = vld [vmem:[%s628_s1] sm:$0x3]  ;;  %vm349_vm3 = vcmask 3072  }
  0x2a   : > { %298 = vmatprep.subr.bf16.mxu0 %v487_v9  ;;  %v342_v29 = vld [vmem:[%s630_s3] sm:$0xf] }
  0x2b   : > { %v291_v14 = vsel %vm289_vm1, %v449_v13, 0  ;;  %v351_v32 = vld [vmem:[%s631_s4] sm:$0xf] }
  0x2d   : > { %299 = vmatpush1.bf16.msra.mxu0 %v489_v11 }
  0x2e   : > { %451 = vmatprep.subr.msk.bf16.mxu0 %vm289_vm1, %v450_v12 }
  0x31   : > { %301 = vmatpush1.bf16.msra.mxu0 %v291_v14 }
  0x34   : > { %452 = vmatmul.mubr.msk.bf16.vlgmr.msra.gmra.mrb[0].mxu0 %vm285_vm2, %v254_v15 }
 0x107   : > { %v330_v16 = vpop.f32.mrb[0].mxu0 }
 0x108   : > { %v352_v17 = vmul.f32 %v330_v16, %v330_v16  ;;  %v332_v18 = vpop.f32.mrb[1].mxu0  ;;  %v343_v19 = vsel %vm289_vm1, %v330_v16, 0.0 }
 0x109   : > { %v339_v20 = vcombine.low %v330_v16, %v332_v18  ;;  %v353_v21 = vmul.f32 %v332_v18, %v332_v18  ;;  %v334_v22 = vpop.f32.mrb[2].mxu0  ;;  %v344_v23 = vsel %vm289_vm1, %v332_v18, 0.0 }
 0x10a   : > { %v335_v24 = vpop.f32.mrb[3].mxu0  ;;  %v345_v25 = vadd.f32 %v344_v23, %v343_v19  ;;  %v354_v26 = vsel %vm289_vm1, %v352_v17, 0.0 }
 0x10b   : > { %341 = vst [vmem:[%s585_s10] sm:$0xff] %v339_v20  ;;  %v355_v27 = vsel %vm289_vm1, %v353_v21, 0.0 }
 0x10c   : > { %346 = vadd.xlane.f32.xlu0 %v345_v25  ;;  %v356_v28 = vadd.f32 %v355_v27, %v354_v26 }
 0x110   : > { %357 = vadd.xlane.f32.xlu0 %v356_v28 }
 0x199   : > { %v347_v30 = vpop.xlane.xlu0 %346 }
 0x19a   : > { %v348_v31 = vadd.f32 %v347_v30, %v342_v29 }
 0x19c   : > { %350 = vst.msk [vmem:[%s630_s3] sm:$0xf] %vm349_vm3, %v348_v31 }
 0x19d   : > { %v358_v33 = vpop.xlane.xlu0 %357 }
 0x19e   : > { %v359_v34 = vadd.f32 %v358_v33, %v351_v32 }
 0x1a0   : > { %360 = vst.msk [vmem:[%s631_s4] sm:$0xf] %vm349_vm3, %v359_v34 }
 0x1a1 PF: > { %p12_p10 = scmp.ge.s32.totalorder %s560_s19, 4   ;;  %s632_s15 = smov %s510_s16 }
 0x1a2   : > { %s633_s16 = smov %s569_s22  ;;  %s634_s17 = smov %s560_s19 }
 0x1a3   :  { %14 = sbr.rel (!%p12_p10) target bundleno = 2 (0x2), region = 121 }

// kernel: resblock_forward.5
= control target key start
LH: loop header
LB: loop body
LE: loop exit
PB: predicated region body
PF: predicated region fallthrough
CT: control target
= control target key end

     0   :  { %s390_s18 = smov 0   ;;  %s419_s0 = inlined_call_operand.vmem [shape: f32[4,512], index: 0, kind: input, shape index: {}]   ;;  %s420_s1 = inlined_call_operand.vmem [shape: f32[4,1], index: 1, kind: input, shape index: {}]   ;;  %s421_s2 = inlined_call_operand.vmem [shape: f32[4,1], index: 2, kind: input, shape index: {}]   ;;  %s422_s3 = inlined_call_operand.vmem [shape: f32[4,1], index: 3, kind: input, shape index: {}]   ;;  %s423_s4 = inlined_call_operand.vmem [shape: f32[4,1], index: 4, kind: input, shape index: {}]   ;;  %s424_s5 = inlined_call_operand.vmem [shape: f32[4,512], index: 5, kind: output, shape index: {}]  }
   0x1 LB: > { %s326_s19 = sadd.s32 4294967295, %s356_s18   ;;  %p330_p0 = scmp.ge.s32.totalorder %s356_s18, 1  ;;  %s356_s18 = sphi %s390_s18, %s15_s18  }
   0x2   : > { %p188_p1 = scmp.lt.s32.totalorder %s356_s18, 3 }
   0x4   : > { %p189_p2 = pnand %p330_p0, %p188_p1 }
   0x5   : > { %v228_v0 = vld [vmem:[%s420_s1] sm:$0xf] (!%p189_p2)  ;;  %v358_v2 = vmov (!%p189_p2), 0   ;;  %s331_s28 = sshll.u32 (!%p189_p2), %s326_s19, 1  ;;  %v359_v14 = vmov (!%p189_p2), 839922192   ;;  %v249_v16 = vlaneseq (!%p189_p2) }
   0x6   : > { %192 = sbr.rel (%p189_p2) target bundleno = 166 (0xa6), region = 40  ;;  %v230_v1 = vld [vmem:[%s421_s2] sm:$0xf] (!%p189_p2)  ;;  %347 = vset.pattern.permute.xlu0 (!%p189_p2), %v358_v2  ;;  %v229_v3 = vmul.f32 (!%p189_p2), 0.001953125, %v228_v0  ;;  %p217_p3 = scmp.lt.s32.totalorder (!%p189_p2), %s331_s28, 3  ;;  %v247_v15 = vunpack.c.l.s4 (!%p189_p2), %v359_v14 }
   0x7   : > { %v231_v4 = vmul.f32 (!%p189_p2), 0.001953125, %v230_v1  ;;  %v234_v8 = vld [vmem:[%s422_s3] sm:$0xf] (!%p189_p2)  ;;  %v250_v18 = vshrl.u32 (!%p189_p2), %v249_v16, 7 }
   0x8   : > { %v232_v5 = vmul.f32 (!%p189_p2), %v229_v3, %v229_v3  ;;  %v238_v11 = vld [vmem:[%s423_s4] sm:$0xf] (!%p189_p2)  ;;  %v248_v17 = vunpack.c.0.s8 (!%p189_p2), %v247_v15 }
   0xa   : > { %v233_v6 = vsub.f32 (!%p189_p2), %v231_v4, %v232_v5  ;;  %v251_v19 = vsub.s32 (!%p189_p2), %v248_v17, %v250_v18 }
   0xc   : > { %v235_v7 = vadd.f32 (!%p189_p2), 1e-05, %v233_v6 }
   0xd   : > { %s426_s28 = smov (!%p217_p3, %s331_s28), 3 }
   0xe   : > { %348 = vrsqrt.f32 %v235_v7  ;;  %s332_s29 = sshll.u32 %s426_s28, 2 }
   0xf   : > { %s220_s7 = scalar_lea.vmem %s419_s0, %s332_s29  ;;  %s226_s10 = scalar_lea.vmem %s424_s5, %s332_s29 }
  0x10   : > { %v241_v22 = vld [vmem:[%s220_s7] sm:$0xff] }
  0x18   : > { %v349_v9 = vpop.eup %348 }
  0x19   : > { %v237_v10 = vmul.f32 %v349_v9, %v234_v8 }
  0x1b   : > { %244 = vperm.xlu0 %347, %v237_v10   ;;  %v239_v12 = vmul.f32 %v237_v10, %v229_v3 }
  0x1d   : > { %v240_v13 = vsub.f32 %v238_v11, %v239_v12 }
  0x1f   : > { %257 = vperm.xlu0 %347, %v240_v13  }
  0x9a   : > { %v245_v20 = vpop.permute.xlu0 %244 }
  0x9b   : > { %v252_v21 = vrot.slane %v245_v20, %v251_v19 }
  0x9d   : > { %v254_v24 = vmul.f32 %v252_v21, %v241_v22 }
  0x9e   : > { %v258_v23 = vpop.permute.xlu0 %257 }
  0x9f   : > { %v265_v25 = vrot.slane %v258_v23, %v251_v19 }
  0xa1   : > { %v267_v26 = vadd.f32 %v265_v25, %v254_v24 }
  0xa3   : > { %v268_v27 = vmax.f32 %v267_v26, 0.0 }
  0xa5   : > { %269 = vst [vmem:[%s226_s10] sm:$0xff] %v268_v27 }
  0xa6 PF: > { %s15_s18 = sadd.s32 1, %s356_s18  }
  0xa7   : > { %p12_p4 = scmp.ge.s32.totalorder %s15_s18, 4  }
  0xa9   :  { %14 = sbr.rel (!%p12_p4) target bundleno = 1 (0x1), region = 70 }

// kernel: resblock_forward.7
= control target key start
LH: loop header
LB: loop body
LE: loop exit
PB: predicated region body
PF: predicated region fallthrough
CT: control target
= control target key end

     0   :  { %s459_s21 = smov 0   ;;  %s491_s0 = inlined_call_operand.vmem [shape: f32[4,512], index: 0, kind: input, shape index: {}]   ;;  %s492_s1 = inlined_call_operand.vmem [shape: f32[4,512], index: 1, kind: input, shape index: {}]   ;;  %s493_s2 = inlined_call_operand.vmem [shape: f32[4,1], index: 2, kind: input, shape index: {}]   ;;  %s494_s3 = inlined_call_operand.vmem [shape: f32[4,1], index: 3, kind: input, shape index: {}]   ;;  %s495_s4 = inlined_call_operand.vmem [shape: f32[4,1], index: 4, kind: input, shape index: {}]   ;;  %s496_s5 = inlined_call_operand.vmem [shape: f32[4,1], index: 5, kind: input, shape index: {}]   ;;  %s497_s6 = inlined_call_operand.vmem [shape: f32[4,512], index: 6, kind: output, shape index: {}]  }
   0x1 LB: > { %s388_s22 = sadd.s32 4294967295, %s420_s21   ;;  %p392_p0 = scmp.ge.s32.totalorder %s420_s21, 1  ;;  %s420_s21 = sphi %s459_s21, %s16_s21  }
   0x2   : > { %p224_p1 = scmp.lt.s32.totalorder %s420_s21, 3 }
   0x4   : > { %p225_p2 = pnand %p392_p0, %p224_p1 }
   0x5   : > { %v277_v0 = vld [vmem:[%s493_s2] sm:$0xf] (!%p225_p2)  ;;  %v422_v2 = vmov (!%p225_p2), 0   ;;  %s393_s7 = sshll.u32 (!%p225_p2), %s388_s22, 1  ;;  %v423_v14 = vmov (!%p225_p2), 839922192   ;;  %v298_v16 = vlaneseq (!%p225_p2) }
   0x6   : > { %228 = sbr.rel (%p225_p2) target bundleno = 166 (0xa6), region = 44  ;;  %v279_v1 = vld [vmem:[%s494_s3] sm:$0xf] (!%p225_p2)  ;;  %411 = vset.pattern.permute.xlu0 (!%p225_p2), %v422_v2  ;;  %v278_v3 = vmul.f32 (!%p225_p2), 0.001953125, %v277_v0  ;;  %p260_p3 = scmp.lt.s32.totalorder (!%p225_p2), %s393_s7, 3  ;;  %v296_v15 = vunpack.c.l.s4 (!%p225_p2), %v423_v14 }
   0x7   : > { %v280_v4 = vmul.f32 (!%p225_p2), 0.001953125, %v279_v1  ;;  %v283_v8 = vld [vmem:[%s495_s4] sm:$0xf] (!%p225_p2)  ;;  %v299_v18 = vshrl.u32 (!%p225_p2), %v298_v16, 7 }
   0x8   : > { %v281_v5 = vmul.f32 (!%p225_p2), %v278_v3, %v278_v3  ;;  %v287_v11 = vld [vmem:[%s496_s5] sm:$0xf] (!%p225_p2)  ;;  %v297_v17 = vunpack.c.0.s8 (!%p225_p2), %v296_v15 }
   0xa   : > { %v282_v6 = vsub.f32 (!%p225_p2), %v280_v4, %v281_v5  ;;  %v300_v19 = vsub.s32 (!%p225_p2), %v297_v17, %v299_v18 }
   0xc   : > { %v284_v7 = vadd.f32 (!%p225_p2), 1e-05, %v282_v6 }
   0xd   : > { %s499_s7 = smov (!%p260_p3, %s393_s7), 3 }
   0xe   : > { %412 = vrsqrt.f32 %v284_v7  ;;  %s394_s8 = sshll.u32 %s499_s7, 2 }
   0xf   : > { %s263_s11 = scalar_lea.vmem %s491_s0, %s394_s8  ;;  %s269_s14 = scalar_lea.vmem %s492_s1, %s394_s8 }
  0x10   : > { %v290_v22 = vld [vmem:[%s263_s11] sm:$0xff]  ;;  %s275_s17 = scalar_lea.vmem %s497_s6, %s394_s8 }
  0x11   : > { %v317_v26 = vld [vmem:[%s269_s14] sm:$0xff] }
  0x18   : > { %v413_v9 = vpop.eup %412 }
  0x19   : > { %v286_v10 = vmul.f32 %v413_v9, %v283_v8 }
  0x1b   : > { %293 = vperm.xlu0 %411, %v286_v10   ;;  %v288_v12 = vmul.f32 %v286_v10, %v278_v3 }
  0x1d   : > { %v289_v13 = vsub.f32 %v287_v11, %v288_v12 }
  0x1f   : > { %306 = vperm.xlu0 %411, %v289_v13  }
  0x9a   : > { %v294_v20 = vpop.permute.xlu0 %293 }
  0x9b   : > { %v301_v21 = vrot.slane %v294_v20, %v300_v19 }
  0x9d   : > { %v303_v24 = vmul.f32 %v301_v21, %v290_v22 }
  0x9e   : > { %v307_v23 = vpop.permute.xlu0 %306 }
  0x9f   : > { %v314_v25 = vrot.slane %v307_v23, %v300_v19 }
  0xa1   : > { %v316_v27 = vadd.f32 %v314_v25, %v303_v24 }
  0xa3   : > { %v318_v28 = vadd.f32 %v317_v26, %v316_v27 }
  0xa5   : > { %319 = vst [vmem:[%s275_s17] sm:$0xff] %v318_v28 }
  0xa6 PF: > { %s16_s21 = sadd.s32 1, %s420_s21  }
  0xa7   : > { %p13_p4 = scmp.ge.s32.totalorder %s16_s21, 4  }
  0xa9   :  { %15 = sbr.rel (!%p13_p4) target bundleno = 1 (0x1), region = 77 }

</bundles_post_ra>
